<compile_context>
chip_gen: v5e
topology: v5e:2x2
jax: 0.10.0
libtpu: 0.0.40
codegen_flags: <defaults>
</compile_context>

<pallas_src>
import functools

import jax
import jax.numpy as jnp
import numpy as np
from jax.experimental import pallas as pl
from jax.experimental.pallas import tpu as pltpu


# ---------------------------------------------------------------------------
# Kernel
# ---------------------------------------------------------------------------
def _cmix_kernel(xk_ref, xr_ref, wk_ref, wv_ref, wr_ref, o_ref, acc_ref):
    """Grid = (num_m_tiles, num_f_tiles).

    xk_ref, xr_ref : (TILE_M, C)   bf16   (token-shift-mixed activations)
    wk_ref         : (C, TILE_F)   bf16
    wv_ref         : (TILE_F, C)   bf16
    wr_ref         : (C, C)        bf16
    o_ref          : (TILE_M, C)   x.dtype
    acc_ref        : (TILE_M, C)   f32 VMEM accumulator for kv
    """
    f = pl.program_id(1)

    @pl.when(f == 0)
    def _init():
        acc_ref[...] = jnp.zeros_like(acc_ref)

    # key: (TILE_M, C) @ (C, TILE_F) -> f32, then relu()**2 in f32 (VPU).
    k = jnp.dot(xk_ref[...], wk_ref[...], preferred_element_type=jnp.float32)
    k = jnp.maximum(k, 0.0)
    k = k * k
    # value: accumulate (TILE_M, TILE_F) @ (TILE_F, C) into f32 accumulator.
    acc_ref[...] += jnp.dot(k.astype(jnp.bfloat16), wv_ref[...],
                            preferred_element_type=jnp.float32)

    @pl.when(f == pl.num_programs(1) - 1)
    def _finalize():
        # receptance gate: (TILE_M, C) @ (C, C) -> sigmoid in f32 (EUP).
        r = jnp.dot(xr_ref[...], wr_ref[...], preferred_element_type=jnp.float32)
        gate = jax.nn.sigmoid(r)
        o_ref[...] = (gate * acc_ref[...]).astype(o_ref.dtype)


# ---------------------------------------------------------------------------
# Wrapper
# ---------------------------------------------------------------------------
def _round_up(x, m):
    return (x + m - 1) // m * m


def _pick_tile_f(F, target):
    """Largest multiple of 128 that divides F and is <= target (else F)."""
    if F <= target:
        return F
    for cand in range(target - target % 128, 127, -128):
        if F % cand == 0:
            return cand
    return F


@functools.partial(jax.jit, static_argnames=("tile_m_target", "tile_f_target"))
def rwkv_cmix_x060(x, time_maa_k, time_maa_r, w_key, w_recept, w_value,
                   *, tile_m_target=256, tile_f_target=1024):
    """x: (B,T,C); time_maa_*: (1,C); w_key: (C,F); w_recept: (C,C); w_value: (F,C)."""
    B, T, C = x.shape
    F = w_key.shape[1]

    # --- token-shift mix in the wrapper (cheap elementwise; keeps the kernel's
    #     row tiles free of cross-tile / cross-batch boundary logic) ---------
    x_prev = jnp.concatenate([jnp.zeros((B, 1, C), x.dtype), x[:, :-1, :]], axis=1)
    xx = x_prev - x
    xk = x + xx * time_maa_k[None, :, :]
    xr = x + xx * time_maa_r[None, :, :]

    # --- flatten (B,T) into rows, pad to a row-tile multiple ----------------
    M = B * T
    tile_m = min(tile_m_target, _round_up(M, 16))     # bf16 sublane pack = 16
    M_pad = _round_up(M, tile_m)
    xk = xk.reshape(M, C)
    xr = xr.reshape(M, C)
    if M_pad != M:
        pad = ((0, M_pad - M), (0, 0))
        xk = jnp.pad(xk, pad)
        xr = jnp.pad(xr, pad)

    # --- bf16 matmul operands (accumulation stays f32 inside the kernel) ----
    xk_b = xk.astype(jnp.bfloat16)
    xr_b = xr.astype(jnp.bfloat16)
    wk_b = w_key.astype(jnp.bfloat16)
    wr_b = w_recept.astype(jnp.bfloat16)
    wv_b = w_value.astype(jnp.bfloat16)

    tile_f = _pick_tile_f(F, tile_f_target)
    num_m = M_pad // tile_m
    num_f = F // tile_f

    grid_spec = pltpu.PrefetchScalarGridSpec(
        num_scalar_prefetch=0,
        grid=(num_m, num_f),
        in_specs=[
            pl.BlockSpec((tile_m, C), lambda i, f: (i, 0)),      # xk
            pl.BlockSpec((tile_m, C), lambda i, f: (i, 0)),      # xr
            pl.BlockSpec((C, tile_f), lambda i, f: (0, f)),      # w_key
            pl.BlockSpec((tile_f, C), lambda i, f: (f, 0)),      # w_value
            pl.BlockSpec((C, C), lambda i, f: (0, 0)),           # w_recept
        ],
        out_specs=pl.BlockSpec((tile_m, C), lambda i, f: (i, 0)),
        scratch_shapes=[pltpu.VMEM((tile_m, C), jnp.float32)],
    )

    itemsize_out = jnp.dtype(x.dtype).itemsize
    cost = pl.CostEstimate(
        flops=2 * M_pad * C * (2 * F + C),
        transcendentals=M_pad * C,                         # sigmoid
        bytes_accessed=(2 * (C * F + F * C + C * C)        # bf16 weights
                        + 2 * 2 * M_pad * C                # bf16 xk, xr
                        + itemsize_out * M_pad * C),       # output
    )

    out = pl.pallas_call(
        _cmix_kernel,
        out_shape=jax.ShapeDtypeStruct((M_pad, C), x.dtype),
        grid_spec=grid_spec,
        compiler_params=pltpu.CompilerParams(
            dimension_semantics=("parallel", "arbitrary"),
            vmem_limit_bytes=48 * 1024 * 1024,             # fits v7x 64 MiB budget
        ),
        cost_estimate=cost,
    )(xk_b, xr_b, wk_b, wv_b, wr_b)

    return out[:M].reshape(B, T, C)


# ---------------------------------------------------------------------------
# References
# ---------------------------------------------------------------------------
def rwkv_cmix_x060_ref_f32(x, time_maa_k, time_maa_r, w_key, w_recept, w_value):
    """Pure-JAX f32 reference matching the PyTorch forward exactly."""
    B, T, C = x.shape
    x_prev = jnp.concatenate([jnp.zeros((B, 1, C), x.dtype), x[:, :-1, :]], axis=1)
    xx = x_prev - x
    xk = x + xx * time_maa_k[None, :, :]
    xr = x + xx * time_maa_r[None, :, :]
    k = jnp.maximum(xk @ w_key, 0.0) ** 2
    kv = k @ w_value
    return jax.nn.sigmoid(xr @ w_recept) * kv


def rwkv_cmix_x060_ref_bf16(x, time_maa_k, time_maa_r, w_key, w_recept, w_value):
    """Reference with the same bf16-operand / f32-accumulate matmul recipe."""
    B, T, C = x.shape
    x_prev = jnp.concatenate([jnp.zeros((B, 1, C), x.dtype), x[:, :-1, :]], axis=1)
    xx = x_prev - x
    xk = (x + xx * time_maa_k[None, :, :]).astype(jnp.bfloat16)
    xr = (x + xx * time_maa_r[None, :, :]).astype(jnp.bfloat16)
    k = jnp.dot(xk.reshape(-1, C), w_key.astype(jnp.bfloat16),
                preferred_element_type=jnp.float32)
    k = jnp.maximum(k, 0.0) ** 2
    kv = jnp.dot(k.astype(jnp.bfloat16), w_value.astype(jnp.bfloat16),
                 preferred_element_type=jnp.float32)
    r = jnp.dot(xr.reshape(-1, C), w_recept.astype(jnp.bfloat16),
                preferred_element_type=jnp.float32)
    return (jax.nn.sigmoid(r) * kv).reshape(B, T, C).astype(x.dtype)


# ---------------------------------------------------------------------------
# Test
# ---------------------------------------------------------------------------
if __name__ == "__main__":
    # Small, tile-friendly shapes consistent with the module:
    #   n_embd (C) = 128, dim_ffn (F) = 256, batch B = 2, seq T = 8.
    B, T, C, F = 2, 8, 128, 256
    n_layer, layer_id = 2, 0

    # Deterministic parameter init following the module's __init__ semantics.
    ratio_1_to_almost0 = 1.0 - layer_id / n_layer            # = 1.0 here
    ddd = (np.arange(C, dtype=np.float32) / C)                # ddd[0,0,i] = i / n_embd
    time_maa_k = jnp.asarray((1.0 - np.power(ddd, ratio_1_to_almost0)).reshape(1, C),
                             jnp.float32)
    time_maa_r = jnp.asarray((1.0 - np.power(ddd, ratio_1_to_almost0)).reshape(1, C),
                             jnp.float32)

    key = jax.random.PRNGKey(0)
    k1, k2, k3, k4 = jax.random.split(key, 4)
    # Linear weights stored already transposed (in_dim, out_dim) for y = x @ W.
    w_key    = jax.random.normal(k1, (C, F), jnp.float32) * (1.0 / np.sqrt(C))
    w_recept = jax.random.normal(k2, (C, C), jnp.float32) * (1.0 / np.sqrt(C))
    w_value  = jax.random.normal(k3, (F, C), jnp.float32) * (1.0 / np.sqrt(F))
    x        = jax.random.normal(k4, (B, T, C), jnp.float32)

    out = rwkv_cmix_x060(x, time_maa_k, time_maa_r, w_key, w_recept, w_value)
    out = jax.block_until_ready(out)

    # Tight check against a reference using the same bf16-operand matmul recipe.
    ref_bf16 = rwkv_cmix_x060_ref_bf16(x, time_maa_k, time_maa_r,
                                       w_key, w_recept, w_value)
    np.testing.assert_allclose(np.asarray(out), np.asarray(ref_bf16),
                               rtol=2e-3, atol=2e-3)

    # Loose check against the exact f32 PyTorch-equivalent reference
    # (bf16 matmul operands cost ~1% relative error).
    ref_f32 = rwkv_cmix_x060_ref_f32(x, time_maa_k, time_maa_r,
                                     w_key, w_recept, w_value)
    np.testing.assert_allclose(np.asarray(out), np.asarray(ref_f32),
                               rtol=5e-2, atol=5e-2)

    print("KERNEL_OK")
</pallas_src>

<mosaic_0001>
module attributes {stable_mosaic.version = 11 : i64} {
  func.func @_cmix_kernel(%arg0: i32, %arg1: i32, %arg2: memref<16x128xbf16, #tpu.memory_space<vmem>>, %arg3: memref<16x128xbf16, #tpu.memory_space<vmem>>, %arg4: memref<128x256xbf16, #tpu.memory_space<vmem>>, %arg5: memref<256x128xbf16, #tpu.memory_space<vmem>>, %arg6: memref<128x128xbf16, #tpu.memory_space<vmem>>, %arg7: memref<16x128xf32, #tpu.memory_space<vmem>>, %arg8: memref<16x128xf32, #tpu.memory_space<vmem>>) attributes {dimension_semantics = [#tpu.dimension_semantics<parallel>, #tpu.dimension_semantics<arbitrary>], iteration_bounds = array<i64: 1, 1>, scalar_prefetch = 0 : i64, scratch_operands = 1 : i64, tpu.core_type = #tpu.core_type<tc>, window_params = [{transform_indices = @transform_0, window_bounds = array<i64: 16, 128>}, {transform_indices = @transform_1, window_bounds = array<i64: 16, 128>}, {transform_indices = @transform_2, window_bounds = array<i64: 128, 256>}, {transform_indices = @transform_3, window_bounds = array<i64: 256, 128>}, {pipeline_mode = #tpu.pipeline_mode<synchronous>, transform_indices = @transform_4, window_bounds = array<i64: 128, 128>}, {transform_indices = @transform_5, window_bounds = array<i64: 16, 128>}]} {
    %c0_i32 = arith.constant 0 : i32
    %0 = arith.cmpi eq, %arg1, %c0_i32 : i32
    %1 = arith.extui %0 : i1 to i32
    %c0_i32_0 = arith.constant 0 : i32
    %2 = arith.cmpi ne, %1, %c0_i32_0 : i32
    scf.if %2 {
      %cst_14 = arith.constant 0.000000e+00 : f32
      %18 = vector.broadcast %cst_14 : f32 to vector<16x128xf32>
      %c0_15 = arith.constant 0 : index
      %c0_16 = arith.constant 0 : index
      %19 = vector.load %arg8[%c0_15, %c0_16] : memref<16x128xf32, #tpu.memory_space<vmem>>, vector<16x128xf32>
      tpu.vector_store %arg8[%c0_15, %c0_16], %18 {strides = array<i32>} : memref<16x128xf32, #tpu.memory_space<vmem>>, vector<16x128xf32>,
    } else {
    }
    %c0 = arith.constant 0 : index
    %c0_1 = arith.constant 0 : index
    %3 = vector.load %arg2[%c0, %c0_1] : memref<16x128xbf16, #tpu.memory_space<vmem>>, vector<16x128xbf16>
    %c0_2 = arith.constant 0 : index
    %c0_3 = arith.constant 0 : index
    %4 = vector.load %arg4[%c0_2, %c0_3] : memref<128x256xbf16, #tpu.memory_space<vmem>>, vector<128x256xbf16>
    %cst = arith.constant dense<0.000000e+00> : vector<16x256xf32>
    %5 = tpu.matmul %3, %4, %cst {dimension_numbers = #tpu.dot_dimension_numbers<[1], [0], [0], [1], [0, 0, 1, 1], [], []>} : vector<16x128xbf16>, vector<128x256xbf16>, vector<16x256xf32> -> vector<16x256xf32>
    %cst_4 = arith.constant 0.000000e+00 : f32
    %6 = vector.broadcast %cst_4 : f32 to vector<16x256xf32>
    %7 = arith.maximumf %5, %6 : vector<16x256xf32>
    %8 = arith.mulf %7, %7 : vector<16x256xf32>
    %c0_5 = arith.constant 0 : index
    %c0_6 = arith.constant 0 : index
    %9 = vector.load %arg8[%c0_5, %c0_6] : memref<16x128xf32, #tpu.memory_space<vmem>>, vector<16x128xf32>
    %10 = arith.truncf %8 : vector<16x256xf32> to vector<16x256xbf16>
    %c0_7 = arith.constant 0 : index
    %c0_8 = arith.constant 0 : index
    %11 = vector.load %arg5[%c0_7, %c0_8] : memref<256x128xbf16, #tpu.memory_space<vmem>>, vector<256x128xbf16>
    %cst_9 = arith.constant dense<0.000000e+00> : vector<16x128xf32>
    %12 = tpu.matmul %10, %11, %cst_9 {dimension_numbers = #tpu.dot_dimension_numbers<[1], [0], [0], [1], [0, 0, 1, 1], [], []>} : vector<16x256xbf16>, vector<256x128xbf16>, vector<16x128xf32> -> vector<16x128xf32>
    %13 = arith.addf %9, %12 : vector<16x128xf32>
    %c0_10 = arith.constant 0 : index
    %c0_11 = arith.constant 0 : index
    %14 = vector.load %arg8[%c0_10, %c0_11] : memref<16x128xf32, #tpu.memory_space<vmem>>, vector<16x128xf32>
    tpu.vector_store %arg8[%c0_10, %c0_11], %13 {strides = array<i32>} : memref<16x128xf32, #tpu.memory_space<vmem>>, vector<16x128xf32>,
    %c0_i32_12 = arith.constant 0 : i32
    %15 = arith.cmpi eq, %arg1, %c0_i32_12 : i32
    %16 = arith.extui %15 : i1 to i32
    %c0_i32_13 = arith.constant 0 : i32
    %17 = arith.cmpi ne, %16, %c0_i32_13 : i32
    scf.if %17 {
      %c0_14 = arith.constant 0 : index
      %c0_15 = arith.constant 0 : index
      %18 = vector.load %arg3[%c0_14, %c0_15] : memref<16x128xbf16, #tpu.memory_space<vmem>>, vector<16x128xbf16>
      %c0_16 = arith.constant 0 : index
      %c0_17 = arith.constant 0 : index
      %19 = vector.load %arg6[%c0_16, %c0_17] : memref<128x128xbf16, #tpu.memory_space<vmem>>, vector<128x128xbf16>
      %cst_18 = arith.constant dense<0.000000e+00> : vector<16x128xf32>
      %20 = tpu.matmul %18, %19, %cst_18 {dimension_numbers = #tpu.dot_dimension_numbers<[1], [0], [0], [1], [0, 0, 1, 1], [], []>} : vector<16x128xbf16>, vector<128x128xbf16>, vector<16x128xf32> -> vector<16x128xf32>
      %21 = arith.negf %20 : vector<16x128xf32>
      %22 = math.exp %21 : vector<16x128xf32>
      %cst_19 = arith.constant 1.000000e+00 : f32
      %23 = vector.broadcast %cst_19 : f32 to vector<16x128xf32>
      %24 = arith.addf %23, %22 : vector<16x128xf32>
      %25 = arith.divf %23, %24 : vector<16x128xf32>
      %c0_20 = arith.constant 0 : index
      %c0_21 = arith.constant 0 : index
      %26 = vector.load %arg8[%c0_20, %c0_21] : memref<16x128xf32, #tpu.memory_space<vmem>>, vector<16x128xf32>
      %27 = arith.mulf %25, %26 : vector<16x128xf32>
      %c0_22 = arith.constant 0 : index
      %c0_23 = arith.constant 0 : index
      %28 = vector.load %arg7[%c0_22, %c0_23] : memref<16x128xf32, #tpu.memory_space<vmem>>, vector<16x128xf32>
      tpu.vector_store %arg7[%c0_22, %c0_23], %27 {strides = array<i32>} : memref<16x128xf32, #tpu.memory_space<vmem>>, vector<16x128xf32>,
    } else {
    }
    return
  }
  func.func @transform_0(%arg0: i32, %arg1: i32) -> (i32, i32) {
    %c0_i32 = arith.constant 0 : i32
    %c0_i32_0 = arith.constant 0 : i32
    return %arg0, %c0_i32 : i32, i32
  }
  func.func @transform_1(%arg0: i32, %arg1: i32) -> (i32, i32) {
    %c0_i32 = arith.constant 0 : i32
    %c0_i32_0 = arith.constant 0 : i32
    return %arg0, %c0_i32 : i32, i32
  }
  func.func @transform_2(%arg0: i32, %arg1: i32) -> (i32, i32) {
    %c0_i32 = arith.constant 0 : i32
    %c0_i32_0 = arith.constant 0 : i32
    return %c0_i32, %arg1 : i32, i32
  }
  func.func @transform_3(%arg0: i32, %arg1: i32) -> (i32, i32) {
    %c0_i32 = arith.constant 0 : i32
    %c0_i32_0 = arith.constant 0 : i32
    return %arg1, %c0_i32 : i32, i32
  }
  func.func @transform_4(%arg0: i32, %arg1: i32) -> (i32, i32) {
    %c0_i32 = arith.constant 0 : i32
    %c0_i32_0 = arith.constant 0 : i32
    %c0_i32_1 = arith.constant 0 : i32
    return %c0_i32, %c0_i32_0 : i32, i32
  }
  func.func @transform_5(%arg0: i32, %arg1: i32) -> (i32, i32) {
    %c0_i32 = arith.constant 0 : i32
    %c0_i32_0 = arith.constant 0 : i32
    return %arg0, %c0_i32 : i32, i32
  }
}

</mosaic_0001>

<bundles_post_ra>
// kernel: rwkv_cmix_x060.1
= control target key start
LH: loop header
LB: loop body
LE: loop exit
PB: predicated region body
PF: predicated region fallthrough
CT: control target
= control target key end

     0   :  { %s941_s0 = inlined_call_operand.vmem [shape: bf16[16,128], index: 0, kind: input, shape index: {}]   ;;  %s942_s1 = inlined_call_operand.vmem [shape: bf16[16,128], index: 1, kind: input, shape index: {}]   ;;  %s943_s2 = inlined_call_operand.vmem [shape: bf16[128,256], index: 2, kind: input, shape index: {}]   ;;  %s944_s3 = inlined_call_operand.vmem [shape: bf16[256,128], index: 3, kind: input, shape index: {}]   ;;  %s945_s4 = inlined_call_operand.vmem [shape: bf16[128,128], index: 4, kind: input, shape index: {}]   ;;  %s946_s5 = inlined_call_operand.hbm [shape: f32[16,128], index: 5, kind: output, shape index: {}]  }
   0x1   :  { %v544_v0 = vld [vmem:[%s943_s2 + $0x70] sm:$0xf]  ;;  %v668_v1 = vld [vmem:[%s943_s2 + $0x74] sm:$0xf0]  ;;  %v667_v2 = vld [vmem:[%s943_s2 + $0x74] sm:$0xf] }
   0x2   :  { %v545_v3 = vor.u32 %v668_v1, %v544_v0  ;;  %v546_v4 = vld [vmem:[%s943_s2 + $0x78] sm:$0xf0]  ;;  %v536_v5 = vld [vmem:[%s943_s2 + $0x60] sm:$0xf]  ;;  %v666_v6 = vld [vmem:[%s943_s2 + $0x64] sm:$0xf0] }
   0x3   :  { %v549_v7 = vor.u32 %v667_v2, %v546_v4  ;;  %v665_v8 = vld [vmem:[%s943_s2 + $0x64] sm:$0xf]  ;;  %v538_v9 = vld [vmem:[%s943_s2 + $0x68] sm:$0xf0]  ;;  %v537_v10 = vor.u32 %v666_v6, %v536_v5  ;;  %v528_v12 = vld [vmem:[%s943_s2 + $0x50] sm:$0xf] }
   0x4   :  { %131 = vmatpush.bf16.msra.mxu0 %v545_v3  ;;  %v541_v11 = vor.u32 %v665_v8, %v538_v9  ;;  %v664_v13 = vld [vmem:[%s943_s2 + $0x54] sm:$0xf0]  ;;  %v663_v14 = vld [vmem:[%s943_s2 + $0x54] sm:$0xf]  ;;  %v530_v15 = vld [vmem:[%s943_s2 + $0x58] sm:$0xf0] }
   0x5   :  { %145 = vmatpush.bf16.msra.mxu1 %v549_v7  ;;  %v529_v16 = vor.u32 %v664_v13, %v528_v12  ;;  %v533_v17 = vor.u32 %v663_v14, %v530_v15  ;;  %v520_v18 = vld [vmem:[%s943_s2 + $0x40] sm:$0xf]  ;;  %v662_v19 = vld [vmem:[%s943_s2 + $0x44] sm:$0xf0]  ;;  %v661_v20 = vld [vmem:[%s943_s2 + $0x44] sm:$0xf] }
   0x6   :  { %v522_v21 = vld [vmem:[%s943_s2 + $0x48] sm:$0xf0]  ;;  %v521_v22 = vor.u32 %v662_v19, %v520_v18  ;;  %v512_v24 = vld [vmem:[%s943_s2 + $0x30] sm:$0xf]  ;;  %v660_v25 = vld [vmem:[%s943_s2 + $0x34] sm:$0xf0] }
   0x7   :  { %v525_v23 = vor.u32 %v661_v20, %v522_v21 }
   0x8   :  { %132 = vmatpush.bf16.msra.mxu0 %v537_v10 }
   0x9   :  { %146 = vmatpush.bf16.msra.mxu1 %v541_v11 }
   0xc   :  { %133 = vmatpush.bf16.msra.mxu0 %v529_v16 }
   0xd   :  { %147 = vmatpush.bf16.msra.mxu1 %v533_v17 }
   0xe   :  { %10 = vsyncpa [#allocation4], 0  ;;  %v659_v26 = vld [vmem:[%s943_s2 + $0x34] sm:$0xf]  ;;  %v514_v27 = vld [vmem:[%s943_s2 + $0x38] sm:$0xf0]  ;;  %v513_v28 = vor.u32 %v660_v25, %v512_v24 }
   0xf   :  { %v517_v29 = vor.u32 %v659_v26, %v514_v27  ;;  %v504_v30 = vld [vmem:[%s943_s2 + $0x20] sm:$0xf]  ;;  %v658_v31 = vld [vmem:[%s943_s2 + $0x24] sm:$0xf0]  ;;  %v657_v32 = vld [vmem:[%s943_s2 + $0x24] sm:$0xf] }
  0x10   :  { %134 = vmatpush.bf16.msra.mxu0 %v521_v22  ;;  %v506_v33 = vld [vmem:[%s943_s2 + $0x28] sm:$0xf0]  ;;  %v505_v34 = vor.u32 %v658_v31, %v504_v30  ;;  %v496_v36 = vld [vmem:[%s943_s2 + $0x10] sm:$0xf]  ;;  %v656_v37 = vld [vmem:[%s943_s2 + $0x14] sm:$0xf0] }
  0x11   :  { %148 = vmatpush.bf16.msra.mxu1 %v525_v23  ;;  %v509_v35 = vor.u32 %v657_v32, %v506_v33  ;;  %v655_v38 = vld [vmem:[%s943_s2 + $0x14] sm:$0xf]  ;;  %v498_v39 = vld [vmem:[%s943_s2 + $0x18] sm:$0xf0]  ;;  %v497_v40 = vor.u32 %v656_v37, %v496_v36  ;;  %v488_v42 = vld [vmem:[%s943_s2] sm:$0xf] }
  0x12   :  { %v501_v41 = vor.u32 %v655_v38, %v498_v39  ;;  %v654_v43 = vld [vmem:[%s943_s2 + $0x4] sm:$0xf0]  ;;  %v653_v44 = vld [vmem:[%s943_s2 + $0x4] sm:$0xf]  ;;  %v490_v45 = vld [vmem:[%s943_s2 + $0x8] sm:$0xf0] }
  0x13   :  { %v489_v46 = vor.u32 %v654_v43, %v488_v42  ;;  %v493_v47 = vor.u32 %v653_v44, %v490_v45  ;;  %v693_v48 = vld [vmem:[%s945_s4 + $0x38] sm:$0xff]  ;;  %v652_v49 = vld [vmem:[%s941_s0] sm:$0xff]  ;;  %v692_v52 = vld [vmem:[%s945_s4 + $0x30] sm:$0xff]  ;;  %s470_s6 = sshll.u32 %s946_s5, 4  ;;  %s732_s7 = smov 128   ;;  %s471_s6 = int_to_ptr.hbm [resolvable:$true] %s470_s6 }
  0x14   :  { %135 = vmatpush.bf16.msra.mxu0 %v513_v28  ;;  %v676_v50 = vld [vmem:[%s944_s3 + $0x38] sm:$0xff]  ;;  %v675_v53 = vld [vmem:[%s944_s3 + $0x30] sm:$0xff]  ;;  %v691_v55 = vld [vmem:[%s945_s4 + $0x28] sm:$0xff]  ;;  %s733_s8 = smov 8  }
  0x15   :  { %149 = vmatpush.bf16.msra.mxu1 %v517_v29  ;;  %v684_v51 = vld [vmem:[%s944_s3 + $0x78] sm:$0xff]  ;;  %299 = vmatpush.bf16.msra.mxu2 %v676_v50  ;;  %v683_v54 = vld [vmem:[%s944_s3 + $0x70] sm:$0xff]  ;;  %v674_v56 = vld [vmem:[%s944_s3 + $0x28] sm:$0xff] }
  0x16   :  { %313 = vmatpush.bf16.msra.mxu3 %v684_v51  ;;  %v682_v57 = vld [vmem:[%s944_s3 + $0x68] sm:$0xff]  ;;  %v690_v58 = vld [vmem:[%s945_s4 + $0x20] sm:$0xff]  ;;  %v689_v61 = vld [vmem:[%s945_s4 + $0x18] sm:$0xff] }
  0x17   :  { %v673_v59 = vld [vmem:[%s944_s3 + $0x20] sm:$0xff]  ;;  %v688_v62 = vld [vmem:[%s945_s4 + $0x10] sm:$0xff]  ;;  %v687_v63 = vld [vmem:[%s945_s4 + $0x8] sm:$0xff] }
  0x18   :  { %136 = vmatpush.bf16.msra.mxu0 %v505_v34  ;;  %v681_v60 = vld [vmem:[%s944_s3 + $0x60] sm:$0xff]  ;;  %v672_v2 = vld [vmem:[%s944_s3 + $0x18] sm:$0xff]  ;;  %v671_v4 = vld [vmem:[%s944_s3 + $0x10] sm:$0xff] }
  0x19   :  { %150 = vmatpush.bf16.msra.mxu1 %v509_v35  ;;  %300 = vmatpush.bf16.msra.mxu2 %v675_v53  ;;  %v686_v0 = vld [vmem:[%s945_s4] sm:$0xff]  ;;  %v680_v3 = vld [vmem:[%s944_s3 + $0x58] sm:$0xff]  ;;  %v679_v5 = vld [vmem:[%s944_s3 + $0x50] sm:$0xff] }
  0x1a   :  { %314 = vmatpush.bf16.msra.mxu3 %v683_v54  ;;  %v685_v1 = vld [vmem:[%s942_s1] sm:$0xff]  ;;  %v670_v6 = vld [vmem:[%s944_s3 + $0x8] sm:$0xff] }
  0x1b   :  { %v678_v7 = vld [vmem:[%s944_s3 + $0x48] sm:$0xff]  ;;  %v669_v8 = vld [vmem:[%s944_s3] sm:$0xff] }
  0x1c   :  { %137 = vmatpush.bf16.msra.mxu0 %v497_v40  ;;  %v677_v9 = vld [vmem:[%s944_s3 + $0x40] sm:$0xff]  ;;  %s731_s3 = smov [#allocation3]  }
  0x1d   :  { %151 = vmatpush.bf16.msra.mxu1 %v501_v41  ;;  %301 = vmatpush.bf16.msra.mxu2 %v674_v56  ;;  %s468_s28 = sshll.u32 %s731_s3, 4  ;;  %s469_s28 = int_to_ptr.vmem [resolvable:$true] %s468_s28 }
  0x1e   :  { %315 = vmatpush.bf16.msra.mxu3 %v682_v57 }
  0x20   :  { %138 = vmatpush.bf16.msra.mxu0 %v489_v46 }
  0x21   :  { %152 = vmatpush.bf16.msra.mxu1 %v493_v47  ;;  %302 = vmatpush.bf16.msra.mxu2 %v673_v59 }
  0x22   :  { %316 = vmatpush.bf16.msra.mxu3 %v681_v60 }
  0x23   :  { %139 = vmatmul.bf16.vlgmr.msra.gmra.mxu0 %v652_v49 }
  0x24   :  { %406 = vmatpush.bf16.msrb.mxu0 %v693_v48  ;;  %153 = vmatmul.bf16.vlgmr.msra.gmra.mxu1 %v652_v49 }
  0x25   :  { %303 = vmatpush.bf16.msra.mxu2 %v672_v2 }
  0x26   :  { %317 = vmatpush.bf16.msra.mxu3 %v680_v3 }
  0x28   :  { %407 = vmatpush.bf16.msrb.mxu0 %v692_v52 }
  0x29   :  { %304 = vmatpush.bf16.msra.mxu2 %v671_v4 }
  0x2a   :  { %318 = vmatpush.bf16.msra.mxu3 %v679_v5 }
  0x2c   :  { %408 = vmatpush.bf16.msrb.mxu0 %v691_v55 }
  0x2d   :  { %305 = vmatpush.bf16.msra.mxu2 %v670_v6 }
  0x2e   :  { %319 = vmatpush.bf16.msra.mxu3 %v678_v7 }
  0x30   :  { %409 = vmatpush.bf16.msrb.mxu0 %v690_v58 }
  0x31   :  { %306 = vmatpush.bf16.msra.mxu2 %v669_v8 }
  0x32   :  { %320 = vmatpush.bf16.msra.mxu3 %v677_v9 }
  0x34   :  { %410 = vmatpush.bf16.msrb.mxu0 %v689_v61 }
  0x38   :  { %411 = vmatpush.bf16.msrb.mxu0 %v688_v62 }
  0x3c   :  { %412 = vmatpush.bf16.msrb.mxu0 %v687_v63 }
  0x40   :  { %413 = vmatpush.bf16.msrb.mxu0 %v686_v0 }
  0x43   :  { %414 = vmatmul.bf16.vlgmr.msrb.gmra.mxu0 %v685_v1 }
  0xa0   :  { %v140_v10 = vpop.f32.mrf.mxu0 }
  0xa1   :  { %v154_v11 = vpop.f32.mrf.mxu1  ;;  %v159_v12 = vmax.f32 %v140_v10, 0.0 }
  0xa2   :  { %v160_v13 = vmax.f32 %v154_v11, 0.0 }
  0xa3   :  { %v163_v18 = vmul.f32 %v159_v12, %v159_v12 }
  0xa4   :  { %v164_v20 = vmul.f32 %v160_v13, %v160_v13 }
  0xa8   :  { %v142_v14 = vpop.f32.mrf.mxu0 }
  0xa9   :  { %v161_v15 = vmax.f32 %v142_v14, 0.0  ;;  %v156_v16 = vpop.f32.mrf.mxu1 }
  0xaa   :  { %v162_v17 = vmax.f32 %v156_v16, 0.0 }
  0xab   :  { %v165_v19 = vmul.f32 %v161_v15, %v161_v15 }
  0xac   :  { %v166_v21 = vmul.f32 %v162_v17, %v162_v17 }
  0xad   :  { %v169_v22 = vpack.c.bf16 %v165_v19, %v163_v18 }
  0xae   :  { %v170_v23 = vpack.c.bf16 %v166_v21, %v164_v20 }
  0xaf   :  { %307 = vmatmul.bf16.vlgmr.msra.gmra.mxu2 %v169_v22 }
  0xb0   :  { %321 = vmatmul.bf16.vlgmr.msra.gmra.mxu3 %v170_v23 }
  0xc0   :  { %v415_v24 = vpop.f32.mrf.mxu0 }
  0xc1   :  { %v650_v25 = vmul.f32 -1.442695, %v415_v24 }
  0xc3   :  { %697 = vpow2.f32 %v650_v25 }
  0xc8   :  { %v417_v26 = vpop.f32.mrf.mxu0 }
  0xc9   :  { %v651_v27 = vmul.f32 -1.442695, %v417_v26  ;;  %v698_v28 = vpop.eup %697 }
  0xca   :  { %v426_v29 = vadd.f32 1.0, %v698_v28 }
  0xcb   :  { %699 = vpow2.f32 %v651_v27 }
  0xcc   :  { %701 = vrcp.f32 %v426_v29  ;;  %vm433_vm0 = vweird.f32 %v426_v29  ;;  %v439_v38 = vand.u32 2147483648, %v426_v29  ;;  %v437_v40 = vand.u32 2147483647, %v426_v29 }
  0xce   :  { %v440_v42 = vor.u32 1.1754944e-38, %v439_v38  ;;  %vm438_vm3 = vcmp.eq.f32.partialorder %v437_v40, 8.507059e+37 }
  0xd1   :  { %v700_v30 = vpop.eup %699 }
  0xd2   :  { %v427_v31 = vadd.f32 1.0, %v700_v30  ;;  %v702_v32 = vpop.eup %701 }
  0xd3   :  { %v429_v33 = vmul.f32 %v702_v32, %v426_v29  ;;  %vm434_vm1 = vweird.f32 %v702_v32 }
  0xd4   :  { %703 = vrcp.f32 %v427_v31  ;;  %vm435_vm2 = vmor %vm433_vm0, %vm434_vm1  ;;  %vm448_vm4 = vweird.f32 %v427_v31  ;;  %v454_v49 = vand.u32 2147483648, %v427_v31  ;;  %v452_v52 = vand.u32 2147483647, %v427_v31 }
  0xd5   :  { %v430_v34 = vsub.f32 1.0, %v429_v33 }
  0xd6   :  { %v455_v53 = vor.u32 1.1754944e-38, %v454_v49  ;;  %vm453_vm7 = vcmp.eq.f32.partialorder %v452_v52, 8.507059e+37 }
  0xd7   :  { %v431_v37 = vmul.f32 %v702_v32, %v430_v34 }
  0xd9   :  { %v432_v39 = vadd.f32 %v702_v32, %v431_v37 }
  0xda   :  { %v704_v35 = vpop.eup %703 }
  0xdb   :  { %v444_v36 = vmul.f32 %v704_v35, %v427_v31  ;;  %v436_v44 = vsel %vm435_vm2, %v702_v32, %v432_v39  ;;  %vm449_vm5 = vweird.f32 %v704_v35 }
  0xdc   :  { %v441_v48 = vsel %vm438_vm3, %v440_v42, %v436_v44  ;;  %vm450_vm6 = vmor %vm448_vm4, %vm449_vm5 }
  0xdd   :  { %v445_v41 = vsub.f32 1.0, %v444_v36 }
  0xdf   :  { %v446_v45 = vmul.f32 %v704_v35, %v445_v41 }
  0xe1   :  { %v447_v51 = vadd.f32 %v704_v35, %v446_v45 }
  0xe3   :  { %v451_v55 = vsel %vm450_vm6, %v704_v35, %v447_v51 }
  0xe4   :  { %v456_v58 = vsel %vm453_vm7, %v455_v53, %v451_v55 }
 0x132   :  { %v308_v43 = vpop.f32.mrf.mxu2 }
 0x133   :  { %v322_v46 = vpop.f32.mrf.mxu3 }
 0x134   :  { %v323_v47 = vadd.f32 %v322_v46, %v308_v43 }
 0x136   :  { %v460_v50 = vmul.f32 %v441_v48, %v323_v47 }
 0x138   :  { %462 = vst [vmem:[#allocation3] sm:$0xff] %v460_v50 }
 0x13a   :  { %v310_v54 = vpop.f32.mrf.mxu2 }
 0x13b   :  { %v324_v56 = vpop.f32.mrf.mxu3 }
 0x13c   :  { %v325_v57 = vadd.f32 %v324_v56, %v310_v54 }
 0x13e   :  { %v461_v59 = vmul.f32 %v456_v58, %v325_v57 }
 0x140   :  { %463 = vst [vmem:[#allocation3 + $0x8] sm:$0xff] %v461_v59 }
 0x141   :  { %476 = dma.vmem_to_hbm [thread:$0]  %s469_s28, 256, %s471_s6, [#allocation4], %s732_s7, %s732_s7, %s733_s8  }
 0x142   :  { %729 = dma.done.wait [#allocation4], 256  }
 0x143   :  { %730 = vsyncadd [#allocation4], 4294967040 }
 0x144   :  { %481 = vsyncpa [#allocation4], 1 }

</bundles_post_ra>
